<compile_context>
chip_gen: v7x
topology: tpu7x:2x2x1
jax: 0.10.0
libtpu: 0.0.40
codegen_flags: <defaults>
</compile_context>

<pallas_src>
from functools import partial

import numpy as np
import jax
import jax.numpy as jnp
from jax.experimental import pallas as pl
from jax.experimental.pallas import tpu as pltpu


def _mix_block_kernel(W, xf_ref, xl_ref, wqk_ref, bqk_ref, aff_ref,
                      yf_ref, yl_ref):
    # xf/xl: (TB, C, W*H) lane-dense activations for the FAD / LFS streams.
    xf = xf_ref[...]
    xl = xl_ref[...]
    TB, C, WH = xf.shape
    H = WH // W

    # --- 1x1 query/key convs as batched channel matmuls ----------------------
    # wqk[s] is (2C, C): rows [:C] = query weight, rows [C:] = key weight.
    w_f = jnp.broadcast_to(wqk_ref[0], (TB, 2 * C, C))
    w_l = jnp.broadcast_to(wqk_ref[1], (TB, 2 * C, C))
    b_f = bqk_ref[0][None, :, :]          # (1, 2C, 1)
    b_l = bqk_ref[1][None, :, :]

    qk_f = jnp.einsum('boc,bcs->bos', w_f, xf,
                      preferred_element_type=jnp.float32) + b_f   # (TB, 2C, WH)
    qk_l = jnp.einsum('boc,bcs->bos', w_l, xl,
                      preferred_element_type=jnp.float32) + b_l

    # --- fused per-channel energy + softmax ----------------------------------
    # energy[b,i,j] = sum_h qF[b,i,h]*kF[b,j,h] + qL[b,i,h]*kL[b,j,h]
    #              == bmm(cat([qF,qL],2), cat([kF^T,kL^T],1)) of the reference.
    q = jnp.concatenate(
        [qk_f[:, :C, :].reshape(TB * C, W, H),
         qk_l[:, :C, :].reshape(TB * C, W, H)], axis=-1)          # (TB*C, W, 2H)
    k = jnp.concatenate(
        [qk_f[:, C:, :].reshape(TB * C, W, H),
         qk_l[:, C:, :].reshape(TB * C, W, H)], axis=-1)
    energy = jnp.einsum('bih,bjh->bij', q, k,
                        preferred_element_type=jnp.float32)       # (TB*C, W, W)

    m = jnp.max(energy, axis=-1, keepdims=True)
    e = jnp.exp(energy - m)
    denom = jnp.sum(e, axis=-1, keepdims=True)
    attn = (e * pl.reciprocal(denom, approx=False)).reshape(TB, C, W * W)

    # --- fused mixing: y = x + scale * (x_other * attn) + offset --------------
    # (depthwise conv + eval BatchNorm + sigmoid-gamma gate folded into affine)
    s_f = aff_ref[0][None, :, :]          # (1, C, 1)
    o_f = aff_ref[1][None, :, :]
    s_l = aff_ref[2][None, :, :]
    o_l = aff_ref[3][None, :, :]

    yf_ref[...] = xf + s_f * (xl * attn) + o_f
    yl_ref[...] = xl + s_l * (xf * attn) + o_l


def mix_block(x_fad, x_lfs, p, *, bn_eps=1e-5, max_tb=8):
    B, C, W, H = x_fad.shape
    assert W == H, "MixBlock requires square spatial dims (W == H)"
    WH = W * H

    xf = x_fad.astype(jnp.float32).reshape(B, C, WH)   # lane-dense last dim
    xl = x_lfs.astype(jnp.float32).reshape(B, C, WH)

    # ---- parameter folding (glue, plain JAX) --------------------------------
    def fold(dw_w, dw_b, bn_g, bn_b, bn_rm, bn_rv, gate_gamma):
        a = bn_g / jnp.sqrt(bn_rv + bn_eps)
        gate = jax.nn.sigmoid(gate_gamma) * 2.0 - 1.0      # shape (1,)
        scale = (a * dw_w * gate).astype(jnp.float32)      # (C,)
        offset = (a * (dw_b - bn_rm) + bn_b).astype(jnp.float32)
        return scale, offset

    # y_FAD path gates x_LFS with LFS_gamma; y_LFS path gates x_FAD with FAD_gamma
    sF, oF = fold(p['FAD_conv_w'], p['FAD_conv_b'], p['FAD_bn_g'], p['FAD_bn_b'],
                  p['FAD_bn_rm'], p['FAD_bn_rv'], p['LFS_gamma'])
    sL, oL = fold(p['LFS_conv_w'], p['LFS_conv_b'], p['LFS_bn_g'], p['LFS_bn_b'],
                  p['LFS_bn_rm'], p['LFS_bn_rv'], p['FAD_gamma'])
    aff = jnp.stack([sF, oF, sL, oL]).reshape(4, C, 1)

    def w2(w):  # (C_out, C_in, 1, 1) -> (C_out, C_in)
        return w.reshape(C, C).astype(jnp.float32)

    wqk = jnp.stack([
        jnp.concatenate([w2(p['FAD_query_w']), w2(p['FAD_key_w'])], axis=0),
        jnp.concatenate([w2(p['LFS_query_w']), w2(p['LFS_key_w'])], axis=0),
    ])                                                     # (2, 2C, C)
    bqk = jnp.stack([
        jnp.concatenate([p['FAD_query_b'], p['FAD_key_b']]),
        jnp.concatenate([p['LFS_query_b'], p['LFS_key_b']]),
    ]).astype(jnp.float32).reshape(2, 2 * C, 1)            # (2, 2C, 1)

    # ---- batch tile: amortize per-step overhead, keep >=2 steps for v7x -----
    tb = min(B, max_tb)
    while B % tb != 0:
        tb -= 1
    while tb > 1 and (B // tb) < 2:
        tb //= 2
        while B % tb != 0:
            tb -= 1
    grid = (B // tb,)

    act_spec = pl.BlockSpec((tb, C, WH), lambda b: (b, 0, 0))
    wqk_spec = pl.BlockSpec((2, 2 * C, C), lambda b: (0, 0, 0))
    bqk_spec = pl.BlockSpec((2, 2 * C, 1), lambda b: (0, 0, 0))
    aff_spec = pl.BlockSpec((4, C, 1), lambda b: (0, 0, 0))

    grid_spec = pltpu.PrefetchScalarGridSpec(
        num_scalar_prefetch=0,
        grid=grid,
        in_specs=[act_spec, act_spec, wqk_spec, bqk_spec, aff_spec],
        out_specs=[act_spec, act_spec],
    )

    yf, yl = pl.pallas_call(
        partial(_mix_block_kernel, W),
        out_shape=(jax.ShapeDtypeStruct((B, C, WH), jnp.float32),
                   jax.ShapeDtypeStruct((B, C, WH), jnp.float32)),
        grid_spec=grid_spec,
        compiler_params=pltpu.CompilerParams(dimension_semantics=("parallel",)),
    )(xf, xl, wqk, bqk, aff)

    return yf.reshape(B, C, W, H), yl.reshape(B, C, W, H)


# ---- pure-JAX reference (mirrors the PyTorch forward) ------------------------
def mix_block_reference(x_fad, x_lfs, p, bn_eps=1e-5):
    B, C, W, H = x_fad.shape

    def conv1x1(x, w, b):
        return jnp.einsum('oc,bcwh->bowh', w[:, :, 0, 0], x) + b[None, :, None, None]

    q_fad = conv1x1(x_fad, p['FAD_query_w'], p['FAD_query_b']).reshape(B * C, W, H)
    q_lfs = conv1x1(x_lfs, p['LFS_query_w'], p['LFS_query_b']).reshape(B * C, W, H)
    M_query = jnp.concatenate([q_fad, q_lfs], axis=2)
    k_fad = jnp.swapaxes(
        conv1x1(x_fad, p['FAD_key_w'], p['FAD_key_b']).reshape(B * C, W, H), 1, 2)
    k_lfs = jnp.swapaxes(
        conv1x1(x_lfs, p['LFS_key_w'], p['LFS_key_b']).reshape(B * C, W, H), 1, 2)
    M_key = jnp.concatenate([k_fad, k_lfs], axis=1)
    energy = jnp.einsum('bik,bkj->bij', M_query, M_key)
    attn = jax.nn.softmax(energy, axis=-1).reshape(B, C, W, W)

    def bn(x, g, b, rm, rv):
        inv = g / jnp.sqrt(rv + bn_eps)
        return inv[None, :, None, None] * (x - rm[None, :, None, None]) + b[None, :, None, None]

    gate_L = jax.nn.sigmoid(p['LFS_gamma']) * 2.0 - 1.0
    att_LFS = x_lfs * attn * gate_L
    y_FAD = x_fad + bn(att_LFS * p['FAD_conv_w'][None, :, None, None]
                       + p['FAD_conv_b'][None, :, None, None],
                       p['FAD_bn_g'], p['FAD_bn_b'], p['FAD_bn_rm'], p['FAD_bn_rv'])

    gate_F = jax.nn.sigmoid(p['FAD_gamma']) * 2.0 - 1.0
    att_FAD = x_fad * attn * gate_F
    y_LFS = x_lfs + bn(att_FAD * p['LFS_conv_w'][None, :, None, None]
                       + p['LFS_conv_b'][None, :, None, None],
                       p['LFS_bn_g'], p['LFS_bn_b'], p['LFS_bn_rm'], p['LFS_bn_rv'])
    return y_FAD, y_LFS


if __name__ == "__main__":
    B, C, W, H = 2, 4, 16, 16
    key = jax.random.PRNGKey(0)
    ks = iter(jax.random.split(key, 32))

    def rnd(shape, scale=0.3):
        return scale * jax.random.normal(next(ks), shape, jnp.float32)

    x_fad = rnd((B, C, W, H), 1.0)
    x_lfs = rnd((B, C, W, H), 1.0)

    params = {
        # 1x1 convs: weight (C_out, C_in, 1, 1), bias (C,)
        'FAD_query_w': rnd((C, C, 1, 1)), 'FAD_query_b': rnd((C,), 0.1),
        'LFS_query_w': rnd((C, C, 1, 1)), 'LFS_query_b': rnd((C,), 0.1),
        'FAD_key_w':   rnd((C, C, 1, 1)), 'FAD_key_b':   rnd((C,), 0.1),
        'LFS_key_w':   rnd((C, C, 1, 1)), 'LFS_key_b':   rnd((C,), 0.1),
        # nn.Parameter(torch.zeros(1)) in the module; set nonzero so the
        # attention branch is actually exercised (deterministic, synthetic).
        'FAD_gamma': jnp.array([0.7], jnp.float32),
        'LFS_gamma': jnp.array([-0.4], jnp.float32),
        # depthwise 1x1 convs (groups=C): PyTorch weight (C,1,1,1) stored as (C,)
        'FAD_conv_w': rnd((C,), 0.5), 'FAD_conv_b': rnd((C,), 0.1),
        'LFS_conv_w': rnd((C,), 0.5), 'LFS_conv_b': rnd((C,), 0.1),
        # BatchNorm2d (eval-mode running stats), eps = 1e-5
        'FAD_bn_g': 1.0 + rnd((C,), 0.1), 'FAD_bn_b': rnd((C,), 0.1),
        'FAD_bn_rm': rnd((C,), 0.1), 'FAD_bn_rv': 1.0 + 0.1 * jnp.abs(rnd((C,))),
        'LFS_bn_g': 1.0 + rnd((C,), 0.1), 'LFS_bn_b': rnd((C,), 0.1),
        'LFS_bn_rm': rnd((C,), 0.1), 'LFS_bn_rv': 1.0 + 0.1 * jnp.abs(rnd((C,))),
    }

    y_fad, y_lfs = mix_block(x_fad, x_lfs, params)
    jax.block_until_ready((y_fad, y_lfs))

    r_fad, r_lfs = mix_block_reference(x_fad, x_lfs, params)
    np.testing.assert_allclose(np.asarray(y_fad), np.asarray(r_fad), rtol=1e-4, atol=1e-4)
    np.testing.assert_allclose(np.asarray(y_lfs), np.asarray(r_lfs), rtol=1e-4, atol=1e-4)

    print("KERNEL_OK")
</pallas_src>

<mosaic_0001>
module attributes {stable_mosaic.version = 11 : i64} {
  func.func @_mix_block_kernel(%arg0: i32, %arg1: memref<1x4x256xf32, #tpu.memory_space<vmem>>, %arg2: memref<1x4x256xf32, #tpu.memory_space<vmem>>, %arg3: memref<2x8x4xf32, #tpu.memory_space<vmem>>, %arg4: memref<2x8x1xf32, #tpu.memory_space<vmem>>, %arg5: memref<4x4x1xf32, #tpu.memory_space<vmem>>, %arg6: memref<1x4x256xf32, #tpu.memory_space<vmem>>, %arg7: memref<1x4x256xf32, #tpu.memory_space<vmem>>) attributes {dimension_semantics = [#tpu.dimension_semantics<parallel>], iteration_bounds = array<i64: 2>, scalar_prefetch = 0 : i64, scratch_operands = 0 : i64, tpu.core_type = #tpu.core_type<tc>, window_params = [{transform_indices = @transform_0, window_bounds = array<i64: 1, 4, 256>}, {transform_indices = @transform_1, window_bounds = array<i64: 1, 4, 256>}, {pipeline_mode = #tpu.pipeline_mode<synchronous>, transform_indices = @transform_2, window_bounds = array<i64: 2, 8, 4>}, {pipeline_mode = #tpu.pipeline_mode<synchronous>, transform_indices = @transform_3, window_bounds = array<i64: 2, 8, 1>}, {pipeline_mode = #tpu.pipeline_mode<synchronous>, transform_indices = @transform_4, window_bounds = array<i64: 4, 4, 1>}, {transform_indices = @transform_5, window_bounds = array<i64: 1, 4, 256>}, {transform_indices = @transform_6, window_bounds = array<i64: 1, 4, 256>}]} {
    %c0 = arith.constant 0 : index
    %c0_0 = arith.constant 0 : index
    %c0_1 = arith.constant 0 : index
    %0 = vector.load %arg1[%c0, %c0_0, %c0_1] : memref<1x4x256xf32, #tpu.memory_space<vmem>>, vector<1x4x256xf32>
    %c0_2 = arith.constant 0 : index
    %c0_3 = arith.constant 0 : index
    %c0_4 = arith.constant 0 : index
    %1 = vector.load %arg2[%c0_2, %c0_3, %c0_4] : memref<1x4x256xf32, #tpu.memory_space<vmem>>, vector<1x4x256xf32>
    %c0_5 = arith.constant 0 : index
    %c0_6 = arith.constant 0 : index
    %c0_7 = arith.constant 0 : index
    %2 = vector.load %arg3[%c0_5, %c0_6, %c0_7] : memref<2x8x4xf32, #tpu.memory_space<vmem>>, vector<1x8x4xf32>
    %3 = vector.shape_cast %2 : vector<1x8x4xf32> to vector<8x4xf32>
    %4 = vector.shape_cast %3 : vector<8x4xf32> to vector<1x8x4xf32>
    %c1 = arith.constant 1 : index
    %c0_8 = arith.constant 0 : index
    %c0_9 = arith.constant 0 : index
    %5 = vector.load %arg3[%c1, %c0_8, %c0_9] : memref<2x8x4xf32, #tpu.memory_space<vmem>>, vector<1x8x4xf32>
    %6 = vector.shape_cast %5 : vector<1x8x4xf32> to vector<8x4xf32>
    %7 = vector.shape_cast %6 : vector<8x4xf32> to vector<1x8x4xf32>
    %c0_10 = arith.constant 0 : index
    %c0_11 = arith.constant 0 : index
    %c0_12 = arith.constant 0 : index
    %8 = vector.load %arg4[%c0_10, %c0_11, %c0_12] : memref<2x8x1xf32, #tpu.memory_space<vmem>>, vector<1x8x1xf32>
    %9 = vector.shape_cast %8 : vector<1x8x1xf32> to vector<8x1xf32>
    %10 = vector.shape_cast %9 : vector<8x1xf32> to vector<1x8x1xf32>
    %c1_13 = arith.constant 1 : index
    %c0_14 = arith.constant 0 : index
    %c0_15 = arith.constant 0 : index
    %11 = vector.load %arg4[%c1_13, %c0_14, %c0_15] : memref<2x8x1xf32, #tpu.memory_space<vmem>>, vector<1x8x1xf32>
    %12 = vector.shape_cast %11 : vector<1x8x1xf32> to vector<8x1xf32>
    %13 = vector.shape_cast %12 : vector<8x1xf32> to vector<1x8x1xf32>
    "tpu.trace_start"() <{level = 10 : i32, message = "boc,bcs->bos"}> : () -> ()
    %cst = arith.constant dense<0.000000e+00> : vector<1x8x256xf32>
    %14 = tpu.matmul %4, %0, %cst {dimension_numbers = #tpu.dot_dimension_numbers<[2], [1], [1], [2], [0, 0, 0, 1, 1, 2], [0], [0]>} : vector<1x8x4xf32>, vector<1x4x256xf32>, vector<1x8x256xf32> -> vector<1x8x256xf32>
    "tpu.trace_stop"() : () -> ()
    %15 = vector.broadcast %10 : vector<1x8x1xf32> to vector<1x8x256xf32>
    %16 = arith.addf %14, %15 : vector<1x8x256xf32>
    "tpu.trace_start"() <{level = 10 : i32, message = "boc,bcs->bos"}> : () -> ()
    %cst_16 = arith.constant dense<0.000000e+00> : vector<1x8x256xf32>
    %17 = tpu.matmul %7, %1, %cst_16 {dimension_numbers = #tpu.dot_dimension_numbers<[2], [1], [1], [2], [0, 0, 0, 1, 1, 2], [0], [0]>} : vector<1x8x4xf32>, vector<1x4x256xf32>, vector<1x8x256xf32> -> vector<1x8x256xf32>
    "tpu.trace_stop"() : () -> ()
    %18 = vector.broadcast %13 : vector<1x8x1xf32> to vector<1x8x256xf32>
    %19 = arith.addf %17, %18 : vector<1x8x256xf32>
    %20 = vector.extract_strided_slice %16 {offsets = [0, 0, 0], sizes = [1, 4, 256], strides = [1, 1, 1]} : vector<1x8x256xf32> to vector<1x4x256xf32>
    %21 = vector.shape_cast %20 : vector<1x4x256xf32> to vector<4x16x16xf32>
    %22 = vector.extract_strided_slice %19 {offsets = [0, 0, 0], sizes = [1, 4, 256], strides = [1, 1, 1]} : vector<1x8x256xf32> to vector<1x4x256xf32>
    %23 = vector.shape_cast %22 : vector<1x4x256xf32> to vector<4x16x16xf32>
    %24 = tpu.concatenate %21, %23 in 2 : vector<4x16x16xf32>, vector<4x16x16xf32> -> vector<4x16x32xf32>
    %25 = vector.extract_strided_slice %16 {offsets = [0, 4, 0], sizes = [1, 4, 256], strides = [1, 1, 1]} : vector<1x8x256xf32> to vector<1x4x256xf32>
    %26 = vector.shape_cast %25 : vector<1x4x256xf32> to vector<4x16x16xf32>
    %27 = vector.extract_strided_slice %19 {offsets = [0, 4, 0], sizes = [1, 4, 256], strides = [1, 1, 1]} : vector<1x8x256xf32> to vector<1x4x256xf32>
    %28 = vector.shape_cast %27 : vector<1x4x256xf32> to vector<4x16x16xf32>
    %29 = tpu.concatenate %26, %28 in 2 : vector<4x16x16xf32>, vector<4x16x16xf32> -> vector<4x16x32xf32>
    "tpu.trace_start"() <{level = 10 : i32, message = "bih,bjh->bij"}> : () -> ()
    %cst_17 = arith.constant dense<0.000000e+00> : vector<4x16x16xf32>
    %30 = tpu.matmul %24, %29, %cst_17 {dimension_numbers = #tpu.dot_dimension_numbers<[2], [2], [1], [1], [0, 0, 0, 1, 1, 1], [0], [0]>} : vector<4x16x32xf32>, vector<4x16x32xf32>, vector<4x16x16xf32> -> vector<4x16x16xf32>
    "tpu.trace_stop"() : () -> ()
    %cst_18 = arith.constant dense<0xFF800000> : vector<4x16xf32>
    %31 = vector.multi_reduction <maximumf>, %30, %cst_18 [2] : vector<4x16x16xf32> to vector<4x16xf32>
    %32 = vector.shape_cast %31 : vector<4x16xf32> to vector<4x16x1xf32>
    %33 = vector.broadcast %32 : vector<4x16x1xf32> to vector<4x16x16xf32>
    %34 = arith.subf %30, %33 : vector<4x16x16xf32>
    %35 = math.exp %34 : vector<4x16x16xf32>
    %cst_19 = arith.constant dense<0.000000e+00> : vector<4x16xf32>
    %36 = vector.multi_reduction <add>, %35, %cst_19 [2] : vector<4x16x16xf32> to vector<4x16xf32>
    %37 = vector.shape_cast %36 : vector<4x16xf32> to vector<4x16x1xf32>
    %38 = tpu.reciprocal %37 : vector<4x16x1xf32> -> vector<4x16x1xf32>
    %39 = vector.broadcast %38 : vector<4x16x1xf32> to vector<4x16x16xf32>
    %40 = arith.mulf %35, %39 : vector<4x16x16xf32>
    %41 = vector.shape_cast %40 : vector<4x16x16xf32> to vector<1x4x256xf32>
    %c0_20 = arith.constant 0 : index
    %c0_21 = arith.constant 0 : index
    %c0_22 = arith.constant 0 : index
    %42 = vector.load %arg5[%c0_20, %c0_21, %c0_22] : memref<4x4x1xf32, #tpu.memory_space<vmem>>, vector<1x4x1xf32>
    %43 = vector.shape_cast %42 : vector<1x4x1xf32> to vector<4x1xf32>
    %44 = vector.shape_cast %43 : vector<4x1xf32> to vector<1x4x1xf32>
    %c1_23 = arith.constant 1 : index
    %c0_24 = arith.constant 0 : index
    %c0_25 = arith.constant 0 : index
    %45 = vector.load %arg5[%c1_23, %c0_24, %c0_25] : memref<4x4x1xf32, #tpu.memory_space<vmem>>, vector<1x4x1xf32>
    %46 = vector.shape_cast %45 : vector<1x4x1xf32> to vector<4x1xf32>
    %47 = vector.shape_cast %46 : vector<4x1xf32> to vector<1x4x1xf32>
    %c2 = arith.constant 2 : index
    %c0_26 = arith.constant 0 : index
    %c0_27 = arith.constant 0 : index
    %48 = vector.load %arg5[%c2, %c0_26, %c0_27] : memref<4x4x1xf32, #tpu.memory_space<vmem>>, vector<1x4x1xf32>
    %49 = vector.shape_cast %48 : vector<1x4x1xf32> to vector<4x1xf32>
    %50 = vector.shape_cast %49 : vector<4x1xf32> to vector<1x4x1xf32>
    %c3 = arith.constant 3 : index
    %c0_28 = arith.constant 0 : index
    %c0_29 = arith.constant 0 : index
    %51 = vector.load %arg5[%c3, %c0_28, %c0_29] : memref<4x4x1xf32, #tpu.memory_space<vmem>>, vector<1x4x1xf32>
    %52 = vector.shape_cast %51 : vector<1x4x1xf32> to vector<4x1xf32>
    %53 = vector.shape_cast %52 : vector<4x1xf32> to vector<1x4x1xf32>
    %54 = arith.mulf %1, %41 : vector<1x4x256xf32>
    %55 = vector.broadcast %44 : vector<1x4x1xf32> to vector<1x4x256xf32>
    %56 = arith.mulf %55, %54 : vector<1x4x256xf32>
    %57 = arith.addf %0, %56 : vector<1x4x256xf32>
    %58 = vector.broadcast %47 : vector<1x4x1xf32> to vector<1x4x256xf32>
    %59 = arith.addf %57, %58 : vector<1x4x256xf32>
    %c0_30 = arith.constant 0 : index
    %c0_31 = arith.constant 0 : index
    %c0_32 = arith.constant 0 : index
    %60 = vector.load %arg6[%c0_30, %c0_31, %c0_32] : memref<1x4x256xf32, #tpu.memory_space<vmem>>, vector<1x4x256xf32>
    tpu.vector_store %arg6[%c0_30, %c0_31, %c0_32], %59 {strides = array<i32>} : memref<1x4x256xf32, #tpu.memory_space<vmem>>, vector<1x4x256xf32>,
    %61 = arith.mulf %0, %41 : vector<1x4x256xf32>
    %62 = vector.broadcast %50 : vector<1x4x1xf32> to vector<1x4x256xf32>
    %63 = arith.mulf %62, %61 : vector<1x4x256xf32>
    %64 = arith.addf %1, %63 : vector<1x4x256xf32>
    %65 = vector.broadcast %53 : vector<1x4x1xf32> to vector<1x4x256xf32>
    %66 = arith.addf %64, %65 : vector<1x4x256xf32>
    %c0_33 = arith.constant 0 : index
    %c0_34 = arith.constant 0 : index
    %c0_35 = arith.constant 0 : index
    %67 = vector.load %arg7[%c0_33, %c0_34, %c0_35] : memref<1x4x256xf32, #tpu.memory_space<vmem>>, vector<1x4x256xf32>
    tpu.vector_store %arg7[%c0_33, %c0_34, %c0_35], %66 {strides = array<i32>} : memref<1x4x256xf32, #tpu.memory_space<vmem>>, vector<1x4x256xf32>,
    return
  }
  func.func @transform_0(%arg0: i32) -> (i32, i32, i32) {
    %c0_i32 = arith.constant 0 : i32
    %c0_i32_0 = arith.constant 0 : i32
    %c0_i32_1 = arith.constant 0 : i32
    return %arg0, %c0_i32, %c0_i32_0 : i32, i32, i32
  }
  func.func @transform_1(%arg0: i32) -> (i32, i32, i32) {
    %c0_i32 = arith.constant 0 : i32
    %c0_i32_0 = arith.constant 0 : i32
    %c0_i32_1 = arith.constant 0 : i32
    return %arg0, %c0_i32, %c0_i32_0 : i32, i32, i32
  }
  func.func @transform_2(%arg0: i32) -> (i32, i32, i32) {
    %c0_i32 = arith.constant 0 : i32
    %c0_i32_0 = arith.constant 0 : i32
    %c0_i32_1 = arith.constant 0 : i32
    %c0_i32_2 = arith.constant 0 : i32
    return %c0_i32, %c0_i32_0, %c0_i32_1 : i32, i32, i32
  }
  func.func @transform_3(%arg0: i32) -> (i32, i32, i32) {
    %c0_i32 = arith.constant 0 : i32
    %c0_i32_0 = arith.constant 0 : i32
    %c0_i32_1 = arith.constant 0 : i32
    %c0_i32_2 = arith.constant 0 : i32
    return %c0_i32, %c0_i32_0, %c0_i32_1 : i32, i32, i32
  }
  func.func @transform_4(%arg0: i32) -> (i32, i32, i32) {
    %c0_i32 = arith.constant 0 : i32
    %c0_i32_0 = arith.constant 0 : i32
    %c0_i32_1 = arith.constant 0 : i32
    %c0_i32_2 = arith.constant 0 : i32
    return %c0_i32, %c0_i32_0, %c0_i32_1 : i32, i32, i32
  }
  func.func @transform_5(%arg0: i32) -> (i32, i32, i32) {
    %c0_i32 = arith.constant 0 : i32
    %c0_i32_0 = arith.constant 0 : i32
    %c0_i32_1 = arith.constant 0 : i32
    return %arg0, %c0_i32, %c0_i32_0 : i32, i32, i32
  }
  func.func @transform_6(%arg0: i32) -> (i32, i32, i32) {
    %c0_i32 = arith.constant 0 : i32
    %c0_i32_0 = arith.constant 0 : i32
    %c0_i32_1 = arith.constant 0 : i32
    return %arg0, %c0_i32, %c0_i32_0 : i32, i32, i32
  }
}

</mosaic_0001>

<bundles_post_ra>
// kernel: tpu_custom_call.1
= control target key start
LH: loop header
LB: loop body
LE: loop exit
PB: predicated region body
PF: predicated region fallthrough
CT: control target
= control target key end

     0   :  { %12 = vsyncpa [#allocation3], 0  ;;  %s3005_s0 = inlined_call_operand.vmem [shape: f32[2,4,256], index: 0, kind: input, shape index: {}]   ;;  %s3006_s1 = inlined_call_operand.vmem [shape: f32[2,4,256], index: 1, kind: input, shape index: {}]   ;;  %s3007_s2 = inlined_call_operand.vmem [shape: f32[2,8,4], index: 2, kind: input, shape index: {}]   ;;  %s3008_s3 = inlined_call_operand.vmem [shape: f32[2,8,1], index: 3, kind: input, shape index: {}]   ;;  %s3009_s4 = inlined_call_operand.vmem [shape: f32[4,4,1], index: 4, kind: input, shape index: {}]   ;;  %s3010_s5 = inlined_call_operand.hbm [shape: f32[2,4,256], index: 5, kind: output, shape index: {0}]   ;;  %s3011_s6 = inlined_call_operand.hbm [shape: f32[2,4,256], index: 6, kind: output, shape index: {1}]  }
   0x1   :  { %14 = vsyncpa [#allocation3 + $0x1], 0 }
   0x2   :  { %15 = vsyncpa [#allocation5], 0 }
   0x3   :  { %17 = vsyncpa [#allocation5 + $0x1], 0  ;;  %s2470_s21 = smov 0   ;;  %s2472_s22 = smov 0  }
   0x4   :  { %s2474_s23 = smov 0   ;;  %s2476_s24 = smov 0  }
   0x5 LB: > { %s2491_s25 = sadd.s32 4294967295, %s2419_s24   ;;  %s2094_s26 = sadd.s32 4294967294, %s2419_s24   ;;  %s2419_s24 = sphi %s2476_s24, %s3019_s24   ;;  %s2415_s23 = sphi %s2474_s23, %s3018_s23   ;;  %s2411_s22 = sphi %s2472_s22, %s3017_s22   ;;  %s2407_s21 = sphi %s2470_s21, %s3016_s21  }
   0x6   : > { %s2495_s27 = sadd.s32 1, %s2419_s24   ;;  %s145_s28 = sadd.s32 1, %s2415_s23 }
   0x7   : > { %s142_s29 = ssub.s32 %s2419_s24, %s2495_s27  ;;  %p155_p0 = scmp.ne.s32.totalorder %s2415_s23, %s2411_s22 }
   0x8   : > { %p143_p1 = scmp.eq.s32.totalorder %s142_s29, 0  ;;  %p156_p2 = scmp.eq.s32.totalorder %s2491_s25, 1 }
   0x9   : > { %p161_p3 = scmp.ne.s32.totalorder %s2411_s22, %s2407_s21  ;;  %p162_p4 = scmp.eq.s32.totalorder %s2094_s26, 1 }
   0xa   : > { %s2506_s30 = scalar_select %p143_p1, %s2415_s23, %s145_s28  }
   0xb   : > { %p2508_p5 = por %p156_p2, %p155_p0  ;;  %p2512_p6 = por %p162_p4, %p161_p3 }
   0xc   : > { %p2097_p7 = scmp.ge.s32.totalorder %s2419_s24, 1  ;;  %p231_p8 = scmp.lt.s32.totalorder %s2419_s24, 3 }
   0xe   : > { %p232_p9 = pnand %p2097_p7, %p231_p8 }
   0xf   : > { %p271_p10 = scmp.lt.s32.totalorder (!%p232_p9), %s2491_s25, 1  ;;  %v2421_v0 = vmov (!%p232_p9), 0.0   ;;  %v2105_v1 = vld [vmem:[%s3008_s3 + $0x8] sm:$0xff] (!%p232_p9)  ;;  %v2422_v2 = vmov (!%p232_p9), 0   ;;  %v286_v3 = vld [vmem:[%s3008_s3] sm:$0xff] (!%p232_p9)  ;;  %vm300_vm0 = vcmask (!%p232_p9), 1043456   ;;  %v509_v32 = vlaneseq (!%p232_p9) }
  0x10   : > { %235 = sbr.rel (%p232_p9) target bundleno = 1288 (0x508), region = 40  ;;  %369 = vmatprep.mubr.f32.mxu0 (!%p232_p9), %v2421_v0  ;;  %454 = vmatprep.mubr.f32.mxu1 (!%p232_p9), %v2421_v0  ;;  %v283_v8 = vld [vmem:[%s3007_s2] sm:$0xff] (!%p232_p9)  ;;  %vm296_vm1 = vcmask (!%p232_p9), 31744   ;;  %v2104_v9 = vld [vmem:[%s3007_s2 + $0x8] sm:$0xff] (!%p232_p9)  ;;  %s2423_s10 = smov (!%p232_p9), 80   ;;  %vm853_vm2 = vcmask (!%p232_p9), 130048  }
  0x11   : > { %2267 = vset.pattern.permute.xlu0 (!%p232_p9), %v2422_v2  ;;  %2288 = vset.pattern.permute.xlu1 (!%p232_p9), %v2422_v2  ;;  %s2426_s13 = smov (!%p232_p9), 96   ;;  %s2427_s14 = smov (!%p232_p9), 16   ;;  %v2430_v30 = vmov (!%p232_p9), 1983009808   ;;  %v2627_v37 = vshrl.u32 (!%p232_p9), %v509_v32, 7  ;;  %vm1238_vm3 = vcmask (!%p232_p9), 261120  }
  0x12   : > { %378 = vperm.xlu0 (!%p232_p9), %2267, %v2105_v1   ;;  %s2428_s15 = smov (!%p232_p9), 64   ;;  %s2429_s16 = smov (!%p232_p9), 32   ;;  %v507_v31 = vunpack.c.l.s4 (!%p232_p9), %v2430_v30  ;;  %v2431_v56 = vmov (!%p232_p9), 1934713408   ;;  %vm2791_vm4 = vmpackc.low (!%p232_p9), %vm1238_vm3, %vm1238_vm3  ;;  %vm1869_vm5 = vcmask (!%p232_p9), 392192   ;;  %vm1871_vm6 = vcmask (!%p232_p9), 523264  }
  0x13   : > { %v540_v57 = vunpack.c.l.s4 (!%p232_p9), %v2431_v56  ;;  %vm1873_vm7 = vcmask (!%p232_p9), 654336   ;;  %vm1875_vm8 = vcmask (!%p232_p9), 785408   ;;  %vm1877_vm9 = vcmask (!%p232_p9), 916480  }
  0x14   : > { %v508_v35 = vunpack.c.0.s8 (!%p232_p9), %v507_v31 }
  0x16   : > { %291 = vperm.xlu0 (!%p232_p9), %2267, %v286_v3   ;;  %v2641_v53 = vsub.s32 (!%p232_p9), %v508_v35, %v2627_v37 }
  0x17   : > { %s272_s11 = scalar_select %p271_p10, %s2491_s25, 1 }
  0x19   : > { %s2139_s12 = sshll.u32 %s272_s11, 3  ;;  %s2424_s11 = smov 112  }
  0x1a   : > { %s2531_s17 = scalar_lea.vmem %s3005_s0, %s2139_s12  ;;  %s2536_s20 = scalar_lea.vmem %s3006_s1, %s2139_s12 }
  0x1b   : > { %v281_v4 = vld [vmem:[%s2531_s17] sm:$0xff]  ;;  %s2425_s12 = smov 48  }
  0x1c   : > { %v282_v5 = vld [vmem:[%s2536_s20] sm:$0xff]  ;;  %v295_v6 = vcombine.high %v281_v4, %v281_v4 }
  0x1d   : > { %v382_v7 = vcombine.high %v282_v5, %v282_v5 }
  0x1e   : > { %2106 = vmatprep.subr.msk.mxu0 %vm300_vm0, %v295_v6 }
  0x1f   : > { %2109 = vmatprep.subr.msk.mxu1 %vm300_vm0, %v382_v7  ;;  %2107 = vmatpush1.msk.msra.mxu0 %vm300_vm0, %v281_v4  ;;  %v541_v7 = vunpack.c.0.s8 %v540_v57 }
  0x20   : > { %2110 = vmatpush1.msk.msra.mxu1 %vm300_vm0, %v282_v5  ;;  %2108 = vmatmul.mubr.msk.f32.vlgmr.msra.gmra.mrb[0].mxu0 %vm296_vm1, %v283_v8 }
  0x21   : > { %2111 = vmatmul.mubr.msk.f32.vlgmr.msra.gmra.mrb[0].mxu1 %vm296_vm1, %v2104_v9 }
  0x91   : > { %v379_v10 = vpop.permute.xlu0 %378 }
  0x95   : > { %v292_v17 = vpop.permute.xlu0 %291 }
  0xf3   : > { %v371_v11 = vpop.f32.mrb[0].mxu0 }
  0xf4   : > { %v456_v12 = vpop.f32.mrb[0].mxu1  ;;  %v373_v14 = vpop.f32.mrb[1].mxu0  ;;  %v2574_v18 = vadd.f32 %v371_v11, %v292_v17 }
  0xf5   : > { %v2546_v13 = vadd.f32 %v456_v12, %v379_v10  ;;  %v458_v15 = vpop.f32.mrb[1].mxu1  ;;  %v2592_v19 = vadd.f32 %v373_v14, %v292_v17 }
  0xf6   : > { %v2560_v16 = vadd.f32 %v458_v15, %v379_v10 }
  0xf7   : > { %648 = vrot.lane.b32.xlu0 %v2546_v13, %s2423_s10  ;;  %642 = vrot.lane.b32.xlu1 %v2546_v13, %s2424_s11  ;;  %v1030_v42 = vrot.slane %v2546_v13, 4 }
  0xf8   : > { %v1038_v50 = vrot.slane %v2560_v16, 4 }
  0xfb   : > { %654 = vrot.lane.b32.xlu0 %v2546_v13, %s2425_s12  ;;  %645 = vrot.lane.b32.xlu1 %v2546_v13, %s2426_s13 }
  0xff   : > { %660 = vrot.lane.b32.xlu0 %v2546_v13, %s2427_s14  ;;  %651 = vrot.lane.b32.xlu1 %v2546_v13, %s2428_s15 }
 0x103   : > { %667 = vrot.lane.b32.xlu0 %v2560_v16, %s2426_s13  ;;  %657 = vrot.lane.b32.xlu1 %v2546_v13, %s2429_s16 }
 0x107   : > { %673 = vrot.lane.b32.xlu0 %v2560_v16, %s2428_s15  ;;  %664 = vrot.lane.b32.xlu1 %v2560_v16, %s2424_s11 }
 0x10b   : > { %679 = vrot.lane.b32.xlu0 %v2560_v16, %s2429_s16  ;;  %670 = vrot.lane.b32.xlu1 %v2560_v16, %s2423_s10 }
 0x10f   : > { %676 = vrot.lane.b32.xlu1 %v2560_v16, %s2425_s12  ;;  %462 = vrot.lane.b32.xlu0 %v2574_v18, %s2424_s11 }
 0x113   : > { %682 = vrot.lane.b32.xlu1 %v2560_v16, %s2427_s14  ;;  %468 = vrot.lane.b32.xlu0 %v2574_v18, %s2423_s10 }
 0x117   : > { %465 = vrot.lane.b32.xlu1 %v2574_v18, %s2426_s13  ;;  %474 = vrot.lane.b32.xlu0 %v2574_v18, %s2425_s12 }
 0x11b   : > { %471 = vrot.lane.b32.xlu1 %v2574_v18, %s2428_s15  ;;  %480 = vrot.lane.b32.xlu0 %v2574_v18, %s2427_s14 }
 0x11f   : > { %477 = vrot.lane.b32.xlu1 %v2574_v18, %s2429_s16  ;;  %487 = vrot.lane.b32.xlu0 %v2592_v19, %s2426_s13 }
 0x123   : > { %484 = vrot.lane.b32.xlu1 %v2592_v19, %s2424_s11  ;;  %493 = vrot.lane.b32.xlu0 %v2592_v19, %s2428_s15 }
 0x127   : > { %490 = vrot.lane.b32.xlu1 %v2592_v19, %s2423_s10  ;;  %499 = vrot.lane.b32.xlu0 %v2592_v19, %s2429_s16 }
 0x12b   : > { %496 = vrot.lane.b32.xlu1 %v2592_v19, %s2425_s12 }
 0x12f   : > { %502 = vrot.lane.b32.xlu1 %v2592_v19, %s2427_s14 }
 0x169   : > { %v2610_v20 = vpop.permute.xlu0 %648  ;;  %v2612_v21 = vpop.permute.xlu1 %642 }
 0x16a   : > { %v1033_v45 = vrot.slane %v2610_v20, 4  ;;  %v1031_v46 = vrot.slane %v2612_v21, 4  ;;  %v693_v15 = vcombine.low %v2612_v21, %v2610_v20 }
 0x16c   : > { %v1070_v60 = vcombine.low %v1031_v46, %v1033_v45  ;;  %v700_v20 = vrot.slane %v693_v15, %v2641_v53 }
 0x16d   : > { %v2614_v22 = vpop.permute.xlu0 %654  ;;  %v646_v23 = vpop.permute.xlu1 %645 }
 0x16e   : > { %v1032_v38 = vrot.slane %v646_v23, 4  ;;  %v1035_v47 = vrot.slane %v2614_v22, 4  ;;  %v685_v8 = vcombine.low %v2546_v13, %v646_v23  ;;  %v1077_v11 = vrot.slane %v1070_v60, %v2641_v53 }
 0x16f   : > { %v2659_v23 = vsub.s32 %v541_v7, %v2627_v37 }
 0x170   : > { %v1062_v54 = vcombine.low %v1030_v42, %v1032_v38  ;;  %v692_v31 = vrot.slane %v685_v8, %v2641_v53 }
 0x171   : > { %v2616_v24 = vpop.permute.xlu0 %660  ;;  %v652_v25 = vpop.permute.xlu1 %651 }
 0x172   : > { %v1037_v39 = vrot.slane %v2616_v24, 4  ;;  %v1034_v40 = vrot.slane %v652_v25, 4  ;;  %v1069_v4 = vrot.slane %v1062_v54, %v2641_v53  ;;  %v709_v12 = vcombine.low %v2614_v22, %v2616_v24 }
 0x173   : > { %v718_v8 = vcombine.high %v692_v31, %v700_v20 }
 0x174   : > { %v1086_v55 = vcombine.low %v1035_v47, %v1037_v39  ;;  %v716_v22 = vrot.slane %v709_v12, %v2641_v53 }
 0x175   : > { %v2618_v26 = vpop.permute.xlu0 %667  ;;  %v658_v27 = vpop.permute.xlu1 %657 }
 0x176   : > { %v1036_v33 = vrot.slane %v658_v27, 4  ;;  %v1040_v43 = vrot.slane %v2618_v26, 4  ;;  %v1093_v5 = vrot.slane %v1086_v55, %v2641_v53  ;;  %v701_v6 = vcombine.low %v652_v25, %v658_v27 }
 0x177   : > { %v1094_v27 = vcombine.low %v1069_v4, %v1077_v11 }
 0x178   : > { %v1078_v48 = vcombine.low %v1034_v40, %v1036_v33  ;;  %v1130_v58 = vcombine.low %v1038_v50, %v1040_v43  ;;  %v708_v13 = vrot.slane %v701_v6, %v2641_v53  ;;  %v717_v40 = vcombine.low %v692_v31, %v700_v20 }
 0x179   : > { %v2620_v28 = vpop.permute.xlu0 %673  ;;  %v2622_v29 = vpop.permute.xlu1 %664  ;;  %v1102_v39 = vrot.slane %v1094_v27, %v2659_v23  ;;  %v1095_v50 = vcombine.high %v1069_v4, %v1077_v11 }
 0x17a   : > { %v1039_v44 = vrot.slane %v2622_v29, 4  ;;  %v1042_v59 = vrot.slane %v2620_v28, 4  ;;  %v1085_v61 = vrot.slane %v1078_v48, %v2641_v53  ;;  %v1137_v9 = vrot.slane %v1130_v58, %v2641_v53 }
 0x17b   : > { %v733_v35 = vcombine.low %v708_v13, %v716_v22  ;;  %v734_v4 = vcombine.high %v708_v13, %v716_v22 }
 0x17c   : > { %v1110_v14 = vcombine.low %v1085_v61, %v1093_v5  ;;  %v1111_v42 = vcombine.high %v1085_v61, %v1093_v5 }
 0x17d   : > { %v2624_v34 = vpop.permute.xlu1 %670  ;;  %v2630_v41 = vpop.permute.xlu0 %679  ;;  %v741_v55 = vrot.slane %v733_v35, %v2659_v23  ;;  %v748_v12 = vrot.slane %v734_v4, %v2659_v23 }
 0x17e   : > { %v1041_v36 = vrot.slane %v2624_v34, 4  ;;  %v1044_v51 = vrot.slane %v2630_v41, 4  ;;  %v1118_v24 = vrot.slane %v1110_v14, %v2659_v23  ;;  %v769_v45 = vcombine.low %v2620_v28, %v2630_v41 }
 0x17f   : > { %v761_v46 = vcombine.low %v2622_v29, %v2624_v34  ;;  %v725_v28 = vrot.slane %v717_v40, %v2659_v23  ;;  %v1125_v34 = vrot.slane %v1111_v42, %v2659_v23 }
 0x180   : > { %v1138_v52 = vcombine.low %v1039_v44, %v1041_v36  ;;  %v1146_v63 = vcombine.low %v1042_v59, %v1044_v51  ;;  %v1127_v48 = vcombine.high %v1102_v39, %v1118_v24  ;;  %v753_v51 = vcombine.low %v2560_v16, %v2618_v26 }
 0x181   : > { %v677_v49 = vpop.permute.xlu1 %676  ;;  %v776_v41 = vrot.slane %v769_v45, %v2641_v53  ;;  %v768_v29 = vrot.slane %v761_v46, %v2641_v53  ;;  %v1109_v26 = vrot.slane %v1095_v50, %v2659_v23  ;;  %v750_v60 = vcombine.high %v725_v28, %v741_v55 }
 0x182   : > { %v1145_v1 = vrot.slane %v1138_v52, %v2641_v53  ;;  %v1043_v2 = vrot.slane %v677_v49, 4  ;;  %v1153_v17 = vrot.slane %v1146_v63, %v2641_v53  ;;  %v760_v58 = vrot.slane %v753_v51, %v2641_v53 }
 0x184   : > { %v1162_v30 = vcombine.low %v1137_v9, %v1145_v1  ;;  %v1163_v47 = vcombine.high %v1137_v9, %v1145_v1  ;;  %v785_v1 = vcombine.low %v760_v58, %v768_v29  ;;  %v786_v15 = vcombine.high %v760_v58, %v768_v29 }
 0x185   : > { %v683_v62 = vpop.permute.xlu1 %682 }
 0x186   : > { %v1045_v3 = vrot.slane %v683_v62, 4  ;;  %v1170_v21 = vrot.slane %v1162_v30, %v2659_v23  ;;  %v777_v36 = vcombine.low %v677_v49, %v683_v62  ;;  %v1126_v49 = vcombine.low %v1102_v39, %v1118_v24  ;;  %v463_v24 = vpop.permute.xlu0 %462 }
 0x187   : > { %v1177_v16 = vrot.slane %v1163_v47, %v2659_v23  ;;  %v749_v62 = vcombine.low %v725_v28, %v741_v55  ;;  %v793_v9 = vrot.slane %v785_v1, %v2659_v23  ;;  %v800_v13 = vrot.slane %v786_v15, %v2659_v23 }
 0x188   : > { %v1154_v10 = vcombine.low %v1043_v2, %v1045_v3  ;;  %v784_v52 = vrot.slane %v777_v36, %v2641_v53  ;;  %v1129_v2 = vcombine.high %v1109_v26, %v1125_v34  ;;  %v1128_v3 = vcombine.low %v1109_v26, %v1125_v34 }
 0x189   : > { %v466_v22 = vpop.permute.xlu1 %465 }
 0x18a   : > { %v1161_v25 = vrot.slane %v1154_v10, %v2641_v53  ;;  %v801_v59 = vcombine.low %v776_v41, %v784_v52  ;;  %v802_v10 = vcombine.high %v776_v41, %v784_v52  ;;  %v864_v50 = vrot.slane %v466_v22, 4 }
 0x18b   : > { %v863_v52 = vrot.slane %v463_v24, 4 }
 0x18c   : > { %v1178_v32 = vcombine.low %v1153_v17, %v1161_v25  ;;  %v1179_v38 = vcombine.high %v1153_v17, %v1161_v25  ;;  %v809_v6 = vrot.slane %v801_v59, %v2659_v23  ;;  %v732_v17 = vrot.slane %v718_v8, %v2659_v23 }
 0x18d   : > { %v816_v25 = vrot.slane %v802_v10, %v2659_v23  ;;  %v472_v20 = vpop.permute.xlu1 %471  ;;  %v505_v59 = vcombine.low %v2574_v18, %v466_v22 }
 0x18e   : > { %v1186_v33 = vrot.slane %v1178_v32, %v2659_v23  ;;  %v1193_v56 = vrot.slane %v1179_v38, %v2659_v23  ;;  %v818_v11 = vcombine.high %v793_v9, %v809_v6  ;;  %v817_v14 = vcombine.low %v793_v9, %v809_v6 }
 0x18f   : > { %v752_v30 = vcombine.high %v732_v17, %v748_v12  ;;  %v751_v27 = vcombine.low %v732_v17, %v748_v12  ;;  %v820_v31 = vcombine.high %v800_v13, %v816_v25  ;;  %v819_v32 = vcombine.low %v800_v13, %v816_v25 }
 0x190   : > { %v1195_v43 = vcombine.high %v1170_v21, %v1186_v33  ;;  %v1194_v44 = vcombine.low %v1170_v21, %v1186_v33  ;;  %v1197_v61 = vcombine.high %v1177_v16, %v1193_v56  ;;  %v1196_v63 = vcombine.low %v1177_v16, %v1193_v56  ;;  %v469_v21 = vpop.permute.xlu0 %468 }
 0x191   : > { %v478_v33 = vpop.permute.xlu1 %477  ;;  %v866_v51 = vrot.slane %v472_v20, 4  ;;  %v2732_v9 = vrot.slane %v505_v59, %v2641_v53 }
 0x192   : > { %v2273_v54 = vpack.i.bf16 %v1195_v43, %v1127_v48  ;;  %v2268_v57 = vpack.i.bf16 %v1194_v44, %v1126_v49  ;;  %v2283_v5 = vpack.i.bf16 %v1197_v61, %v1129_v2  ;;  %v2278_v7 = vpack.i.bf16 %v1196_v63, %v1128_v3 }
 0x193   : > { %v868_v45 = vrot.slane %v478_v33, 4  ;;  %v862_v48 = vrot.slane %v2574_v18, 4  ;;  %v521_v41 = vcombine.low %v472_v20, %v478_v33  ;;  %v870_v63 = vrot.slane %v2592_v19, 4 }
 0x194   : > { %2274 = vrot.lane.b32.xlu1 %v2273_v54, %s2427_s14  ;;  %2269 = vrot.lane.b32.xlu0 %v2268_v57, %s2427_s14  ;;  %v475_v35 = vpop.permute.xlu0 %474  ;;  %v865_v57 = vrot.slane %v469_v21, 4  ;;  %v513_v3 = vcombine.low %v463_v24, %v469_v21 }
 0x195   : > { %v2702_v36 = vpop.permute.xlu1 %484  ;;  %v867_v28 = vrot.slane %v475_v35, 4  ;;  %v910_v29 = vcombine.low %v866_v51, %v868_v45 }
 0x196   : > { %v871_v16 = vrot.slane %v2702_v36, 4  ;;  %v902_v4 = vcombine.low %v863_v52, %v865_v57  ;;  %v2744_v15 = vrot.slane %v513_v3, %v2641_v53 }
 0x197   : > { %v917_v6 = vrot.slane %v910_v29, %v2641_v53 }
 0x198   : > { %833 = vrot.lane.b32.xlu1 %v750_v60, %s2427_s14  ;;  %829 = vrot.lane.b32.xlu0 %v749_v62, %s2427_s14  ;;  %v481_v38 = vpop.permute.xlu0 %480  ;;  %v894_v60 = vcombine.low %v862_v48, %v864_v50  ;;  %v909_v17 = vrot.slane %v902_v4, %v2641_v53 }
 0x199   : > { %v2704_v39 = vpop.permute.xlu1 %490  ;;  %v869_v49 = vrot.slane %v481_v38, 4  ;;  %v529_v61 = vcombine.low %v475_v35, %v481_v38 }
 0x19a   : > { %v873_v54 = vrot.slane %v2704_v39, 4  ;;  %v901_v18 = vrot.slane %v894_v60, %v2641_v53  ;;  %v581_v38 = vcombine.low %v2702_v36, %v2704_v39 }
 0x19b   : > { %v918_v62 = vcombine.low %v867_v28, %v869_v49  ;;  %v2736_v10 = vrot.slane %v529_v61, %v2641_v53 }
 0x19c   : > { %2284 = vrot.lane.b32.xlu1 %v2283_v5, %s2427_s14  ;;  %2279 = vrot.lane.b32.xlu0 %v2278_v7, %s2427_s14  ;;  %v2706_v40 = vpop.permute.xlu0 %487  ;;  %v970_v1 = vcombine.low %v871_v16, %v873_v54  ;;  %v2727_v5 = vrot.slane %v521_v41, %v2641_v53 }
 0x19d   : > { %v2708_v42 = vpop.permute.xlu1 %496  ;;  %v872_v34 = vrot.slane %v2706_v40, 4  ;;  %v573_v22 = vcombine.low %v2592_v19, %v2706_v40  ;;  %v927_v40 = vcombine.high %v901_v18, %v909_v17 }
 0x19e   : > { %v875_v56 = vrot.slane %v2708_v42, 4  ;;  %v2740_v12 = vrot.slane %v970_v1, %v2641_v53 }
 0x19f   : > { %v962_v7 = vcombine.low %v870_v63, %v872_v34 }
 0x1a0   : > { %835 = vrot.lane.b32.xlu1 %v818_v11, %s2427_s14  ;;  %831 = vrot.lane.b32.xlu0 %v817_v14, %s2427_s14  ;;  %v2710_v43 = vpop.permute.xlu0 %493  ;;  %v925_v11 = vrot.slane %v918_v62, %v2641_v53 }
 0x1a1   : > { %v2712_v44 = vpop.permute.xlu1 %502  ;;  %v874_v26 = vrot.slane %v2710_v43, 4 }
 0x1a2   : > { %v877_v47 = vrot.slane %v2712_v44, 4  ;;  %v942_v25 = vcombine.low %v917_v6, %v925_v11  ;;  %v943_v24 = vcombine.high %v917_v6, %v925_v11  ;;  %v597_v21 = vcombine.low %v2708_v42, %v2712_v44 }
 0x1a3   : > { %v2767_v42 = vrot.slane %v573_v22, %v2641_v53  ;;  %v554_v44 = vcombine.high %v2727_v5, %v2736_v10 }
 0x1a4   : > { %841 = vrot.lane.b32.xlu1 %v752_v30, %s2427_s14  ;;  %837 = vrot.lane.b32.xlu0 %v751_v27, %s2427_s14  ;;  %v2714_v46 = vpop.permute.xlu0 %499  ;;  %v986_v58 = vcombine.low %v875_v56, %v877_v47  ;;  %v553_v30 = vcombine.low %v2727_v5, %v2736_v10  ;;  %v969_v27 = vrot.slane %v962_v7, %v2641_v53 }
 0x1a5   : > { %v876_v55 = vrot.slane %v2714_v46, 4  ;;  %v950_v35 = vrot.slane %v942_v25, %v2659_v23  ;;  %v589_v45 = vcombine.low %v2710_v43, %v2714_v46  ;;  %v2772_v36 = vrot.slane %v943_v24, %v2659_v23 }
 0x1a6   : > { %v993_v8 = vrot.slane %v986_v58, %v2641_v53  ;;  %v994_v20 = vcombine.low %v969_v27, %v2740_v12  ;;  %v561_v33 = vrot.slane %v553_v30, %v2659_v23  ;;  %v2776_v43 = vrot.slane %v597_v21, %v2641_v53 }
 0x1a7   : > { %v978_v2 = vcombine.low %v874_v26, %v876_v55  ;;  %v2779_v46 = vrot.slane %v581_v38, %v2641_v53  ;;  %v2782_v50 = vrot.slane %v589_v45, %v2641_v53  ;;  %v995_v26 = vcombine.high %v969_v27, %v2740_v12 }
 0x1a8   : > { %843 = vrot.lane.b32.xlu1 %v820_v31, %s2427_s14  ;;  %839 = vrot.lane.b32.xlu0 %v819_v32, %s2427_s14  ;;  %v537_v31 = vcombine.low %v2732_v9, %v2744_v15  ;;  %v926_v32 = vcombine.low %v901_v18, %v909_v17  ;;  %v1002_v39 = vrot.slane %v994_v20, %v2659_v23 }
 0x1a9   : > { %v985_v14 = vrot.slane %v978_v2, %v2641_v53  ;;  %v621_v58 = vcombine.low %v2782_v50, %v2776_v43  ;;  %v605_v4 = vcombine.low %v2767_v42, %v2779_v46  ;;  %v941_v18 = vrot.slane %v927_v40, %v2659_v23 }
 0x1aa   : > { %v545_v19 = vrot.slane %v537_v31, %v2659_v23  ;;  %v934_v48 = vrot.slane %v926_v32, %v2659_v23  ;;  %v1009_v11 = vrot.slane %v995_v26, %v2659_v23  ;;  %v568_v17 = vrot.slane %v554_v44, %v2659_v23 }
 0x1ab   : > { %v1010_v13 = vcombine.low %v985_v14, %v993_v8  ;;  %v1011_v54 = vcombine.high %v985_v14, %v993_v8  ;;  %v629_v12 = vrot.slane %v621_v58, %v2659_v23  ;;  %v538_v14 = vcombine.high %v2732_v9, %v2744_v15 }
 0x1ac   : > { %v959_v49 = vcombine.high %v934_v48, %v950_v35  ;;  %v570_v52 = vcombine.high %v545_v19, %v561_v33  ;;  %v958_v16 = vcombine.low %v934_v48, %v950_v35  ;;  %v569_v3 = vcombine.low %v545_v19, %v561_v33 }
 0x1ad   : > { %v1018_v47 = vrot.slane %v1010_v13, %v2659_v23  ;;  %v1025_v5 = vrot.slane %v1011_v54, %v2659_v23  ;;  %v961_v25 = vcombine.high %v941_v18, %v2772_v36  ;;  %v613_v27 = vrot.slane %v605_v4, %v2659_v23 }
 0x1ae   : > { %v960_v15 = vcombine.low %v941_v18, %v2772_v36  ;;  %v622_v21 = vcombine.high %v2782_v50, %v2776_v43  ;;  %v552_v44 = vrot.slane %v538_v14, %v2659_v23  ;;  %v606_v36 = vcombine.high %v2767_v42, %v2779_v46 }
 0x1af   : > { %v1027_v57 = vcombine.high %v1002_v39, %v1018_v47  ;;  %v1026_v41 = vcombine.low %v1002_v39, %v1018_v47  ;;  %v1029_v32 = vcombine.high %v1009_v11, %v1025_v5  ;;  %v1028_v24 = vcombine.low %v1009_v11, %v1025_v5 }
 0x1b0   : > { %v638_v38 = vcombine.high %v613_v27, %v629_v12  ;;  %v637_v48 = vcombine.low %v613_v27, %v629_v12  ;;  %v571_v46 = vcombine.low %v552_v44, %v568_v17  ;;  %v620_v54 = vrot.slane %v606_v36, %v2659_v23 }
 0x206   : > { %v2275_v51 = vpop.permute.xlu1 %2274  ;;  %v2270_v28 = vpop.permute.xlu0 %2269 }
 0x207   : > { %v2277_v55 = vunpack.i.h.bf16 %v2275_v51  ;;  %v2276_v56 = vunpack.i.l.bf16 %v2275_v51  ;;  %v2272_v29 = vunpack.i.h.bf16 %v2270_v28  ;;  %v2271_v34 = vunpack.i.l.bf16 %v2270_v28 }
 0x209   : > { %v1232_v59 = vsel %vm853_vm2, %v959_v49, %v2276_v56  ;;  %v1233_v60 = vsel %vm853_vm2, %v1027_v57, %v2277_v55  ;;  %v1231_v63 = vsel %vm853_vm2, %v1026_v41, %v2272_v29  ;;  %v1230_v1 = vsel %vm853_vm2, %v958_v16, %v2271_v34 }
 0x20a   : > { %v2193_v62 = vpack.c.bf16 %v1233_v60, %v1232_v59  ;;  %v834_v2 = vpop.permute.xlu1 %833  ;;  %v2187_v6 = vpack.c.bf16 %v1231_v63, %v1230_v1  ;;  %v830_v8 = vpop.permute.xlu0 %829  ;;  %v636_v49 = vrot.slane %v622_v21, %v2659_v23 }
 0x20b   : > { %v856_v7 = vsel %vm853_vm2, %v570_v52, %v834_v2  ;;  %v854_v10 = vsel %vm853_vm2, %v569_v3, %v830_v8  ;;  %v572_v52 = vcombine.high %v552_v44, %v568_v17 }
 0x20c   : > { %2195 = vmatprep.subr.msk.bf16.mxu1 %vm2791_vm4, %v2193_v62  ;;  %2170 = vmatprep.mubr.msk.f32.mxu1 %vm1238_vm3, %v856_v7  ;;  %v640_v28 = vcombine.high %v620_v54, %v636_v49  ;;  %v639_v29 = vcombine.low %v620_v54, %v636_v49 }
 0x20d   : > { %2189 = vmatprep.subr.msk.bf16.mxu0 %vm2791_vm4, %v2187_v6  ;;  %2163 = vmatprep.mubr.msk.f32.mxu0 %vm1238_vm3, %v854_v10 }
 0x20e   : > { %2192 = vmatpush3.bf16.xpose.msk.msra.mxu0 %vm2791_vm4, %v2187_v6  ;;  %2198 = vmatpush3.bf16.xpose.msk.msra.mxu1 %vm2791_vm4, %v2193_v62  ;;  %v2285_v30 = vpop.permute.xlu1 %2284  ;;  %v2280_v22 = vpop.permute.xlu0 %2279 }
 0x20f   : > { %v2287_v13 = vunpack.i.h.bf16 %v2285_v30  ;;  %v2286_v31 = vunpack.i.l.bf16 %v2285_v30  ;;  %v2282_v20 = vunpack.i.h.bf16 %v2280_v22  ;;  %v2281_v9 = vunpack.i.l.bf16 %v2280_v22 }
 0x211   : > { %v1236_v33 = vsel %vm853_vm2, %v961_v25, %v2286_v31  ;;  %v1237_v35 = vsel %vm853_vm2, %v1029_v32, %v2287_v13  ;;  %v1235_v47 = vsel %vm853_vm2, %v1028_v24, %v2282_v20  ;;  %v1234_v19 = vsel %vm853_vm2, %v960_v15, %v2281_v9 }
 0x212   : > { %v2205_v45 = vpack.c.bf16 %v1237_v35, %v1236_v33  ;;  %v836_v40 = vpop.permute.xlu1 %835  ;;  %v2199_v39 = vpack.c.bf16 %v1235_v47, %v1234_v19  ;;  %v832_v50 = vpop.permute.xlu0 %831 }
 0x213   : > { %v857_v43 = vsel %vm853_vm2, %v638_v38, %v836_v40  ;;  %v855_v51 = vsel %vm853_vm2, %v637_v48, %v832_v50 }
 0x214   : > { %2207 = vmatprep.subr.msk.bf16.mxu1 %vm2791_vm4, %v2205_v45  ;;  %2201 = vmatprep.subr.msk.bf16.mxu0 %vm2791_vm4, %v2199_v39 }
 0x215   : > { %2164 = vmatmul.mubr.msk.f32.vlgmr.msra.gmra.mrb[2].mxu0 %vm1238_vm3, %v855_v51  ;;  %2171 = vmatmul.mubr.msk.f32.vlgmr.msra.gmra.mrb[2].mxu1 %vm1238_vm3, %v857_v43 }
 0x216   : > { %2210 = vmatpush3.bf16.xpose.msk.msra.mxu1 %vm2791_vm4, %v2205_v45  ;;  %v842_v42 = vpop.permute.xlu1 %841  ;;  %2204 = vmatpush3.bf16.xpose.msk.msra.mxu0 %vm2791_vm4, %v2199_v39  ;;  %v838_v56 = vpop.permute.xlu0 %837 }
 0x217   : > { %v860_v55 = vsel %vm853_vm2, %v572_v52, %v842_v42  ;;  %v858_v57 = vsel %vm853_vm2, %v571_v46, %v838_v56 }
 0x218   : > { %2184 = vmatprep.mubr.msk.f32.mxu1 %vm1238_vm3, %v860_v55  ;;  %2177 = vmatprep.mubr.msk.f32.mxu0 %vm1238_vm3, %v858_v57 }
 0x21a   : > { %v844_v41 = vpop.permute.xlu1 %843  ;;  %v840_v16 = vpop.permute.xlu0 %839 }
 0x21b   : > { %v861_v34 = vsel %vm853_vm2, %v640_v28, %v844_v41  ;;  %v859_v26 = vsel %vm853_vm2, %v639_v29, %v840_v16 }
 0x21d   : > { %2185 = vmatmul.mubr.msk.f32.vlgmr.msra.gmra.mrb[4].mxu1 %vm1238_vm3, %v861_v34  ;;  %2178 = vmatmul.mubr.msk.f32.vlgmr.msra.gmra.mrb[4].mxu0 %vm1238_vm3, %v859_v26 }
 0x2e8   : > { %v2165_v58 = vpop.f32.mrb[2].mxu0  ;;  %v2172_v59 = vpop.f32.mrb[2].mxu1 }
 0x2e9   : > { %v1317_v60 = vpop.f32.mrb[3].mxu0  ;;  %v1404_v61 = vpop.f32.mrb[3].mxu1  ;;  %v1596_v62 = vsel %vm853_vm2, %v2172_v59, -inf  ;;  %v1590_v63 = vsel %vm853_vm2, %v2165_v58, -inf }
 0x2ea   : > { %1597 = vmax.xlane.f32.xlu0 %v1596_v62  ;;  %1591 = vmax.xlane.f32.xlu1 %v1590_v63  ;;  %v1587_v1 = vsel %vm853_vm2, %v1317_v60, -inf  ;;  %v1593_v5 = vsel %vm853_vm2, %v1404_v61, -inf }
 0x2ee   : > { %1588 = vmax.xlane.f32.xlu0 %v1587_v1 }
 0x2f0   : > { %v2186_v2 = vpop.f32.mrb[4].mxu1  ;;  %v2179_v3 = vpop.f32.mrb[4].mxu0 }
 0x2f1   : > { %v1578_v4 = vpop.f32.mrb[5].mxu1  ;;  %v1491_v6 = vpop.f32.mrb[5].mxu0  ;;  %v1602_v8 = vsel %vm853_vm2, %v2179_v3, -inf  ;;  %v1608_v10 = vsel %vm853_vm2, %v2186_v2, -inf }
 0x2f2   : > { %1594 = vmax.xlane.f32.xlu0 %v1593_v5  ;;  %v1599_v7 = vsel %vm853_vm2, %v1491_v6, -inf  ;;  %v1605_v18 = vsel %vm853_vm2, %v1578_v4, -inf }
 0x2f3   : > { %1600 = vmax.xlane.f32.xlu1 %v1599_v7 }
 0x2f6   : > { %1603 = vmax.xlane.f32.xlu0 %v1602_v8 }
 0x2f7   : > { %1606 = vmax.xlane.f32.xlu1 %v1605_v18 }
 0x2fa   : > { %1609 = vmax.xlane.f32.xlu0 %v1608_v10 }
 0x377   : > { %v1598_v11 = vpop.xlane.xlu0 %1597  ;;  %v1592_v12 = vpop.xlane.xlu1 %1591 }
 0x378   : > { %v1614_v14 = vsub.f32 %v2172_v59, %v1598_v11  ;;  %v1612_v17 = vsub.f32 %v2165_v58, %v1592_v12 }
 0x37a   : > { %v1621_v30 = vmul.f32 1.442695, %v1612_v17  ;;  %v1625_v25 = vmul.f32 1.442695, %v1614_v14 }
 0x37b   : > { %v1589_v27 = vpop.xlane.xlu0 %1588 }
 0x37c   : > { %v1611_v13 = vsub.f32 %v1317_v60, %v1589_v27  ;;  %2291 = vpow2.f32 %v1621_v30 }
 0x37d   : > { %2293 = vpow2.f32 %v1625_v25 }
 0x37e   : > { %v1619_v31 = vmul.f32 1.442695, %v1611_v13 }
 0x37f   : > { %v1595_v32 = vpop.xlane.xlu0 %1594 }
 0x380   : > { %2295 = vpow2.f32 %v1619_v31  ;;  %v1613_v22 = vsub.f32 %v1404_v61, %v1595_v32  ;;  %v1601_v24 = vpop.xlane.xlu1 %1600 }
 0x381   : > { %v1615_v9 = vsub.f32 %v1491_v6, %v1601_v24 }
 0x382   : > { %v1623_v20 = vmul.f32 1.442695, %v1613_v22 }
 0x383   : > { %v1604_v15 = vpop.xlane.xlu0 %1603  ;;  %v1627_v21 = vmul.f32 1.442695, %v1615_v9 }
 0x384   : > { %2297 = vpow2.f32 %v1623_v20  ;;  %v1616_v33 = vsub.f32 %v2179_v3, %v1604_v15  ;;  %v1607_v35 = vpop.xlane.xlu1 %1606 }
 0x385   : > { %2299 = vpow2.f32 %v1627_v21  ;;  %v1617_v45 = vsub.f32 %v1578_v4, %v1607_v35 }
 0x386   : > { %v1629_v38 = vmul.f32 1.442695, %v1616_v33  ;;  %v2292_v47 = vpop.eup %2291 }
 0x387   : > { %v1610_v19 = vpop.xlane.xlu0 %1609  ;;  %v1631_v40 = vmul.f32 1.442695, %v1617_v45  ;;  %v1638_v44 = vsel %vm853_vm2, %v2292_v47, 0.0  ;;  %v2294_v36 = vpop.eup %2293 }
 0x388   : > { %2301 = vpow2.f32 %v1629_v38  ;;  %v1618_v48 = vsub.f32 %v2186_v2, %v1610_v19  ;;  %1639 = vadd.xlane.f32.xlu0 %v1638_v44  ;;  %v1644_v51 = vsel %vm853_vm2, %v2294_v36, 0.0 }
 0x389   : > { %2303 = vpow2.f32 %v1631_v40 }
 0x38a   : > { %v2296_v39 = vpop.eup %2295  ;;  %v1633_v43 = vmul.f32 1.442695, %v1618_v48 }
 0x38b   : > { %v1635_v50 = vsel %vm853_vm2, %v2296_v39, 0.0 }
 0x38c   : > { %2305 = vpow2.f32 %v1633_v43  ;;  %1636 = vadd.xlane.f32.xlu1 %v1635_v50  ;;  %1645 = vadd.xlane.f32.xlu0 %v1644_v51 }
 0x38e   : > { %v2298_v49 = vpop.eup %2297 }
 0x38f   : > { %v1641_v52 = vsel %vm853_vm2, %v2298_v49, 0.0  ;;  %v2300_v42 = vpop.eup %2299 }
 0x390   : > { %1642 = vadd.xlane.f32.xlu1 %v1641_v52  ;;  %v1647_v55 = vsel %vm853_vm2, %v2300_v42, 0.0 }
 0x392   : > { %v2302_v46 = vpop.eup %2301 }
 0x393   : > { %v1650_v54 = vsel %vm853_vm2, %v2302_v46, 0.0  ;;  %v2304_v56 = vpop.eup %2303 }
 0x394   : > { %1651 = vadd.xlane.f32.xlu0 %v1650_v54  ;;  %1648 = vadd.xlane.f32.xlu1 %v1647_v55  ;;  %v1653_v41 = vsel %vm853_vm2, %v2304_v56, 0.0  ;;  %v1886_v54 = vld [vmem:[%s3009_s4] sm:$0xf] }
 0x396   : > { %v2306_v57 = vpop.eup %2305 }
 0x397   : > { %v1656_v28 = vsel %vm853_vm2, %v2306_v57, 0.0 }
 0x398   : > { %1657 = vadd.xlane.f32.xlu0 %v1656_v28  ;;  %1654 = vadd.xlane.f32.xlu1 %v1653_v41 }
 0x415   : > { %v1640_v29 = vpop.xlane.xlu0 %1639 }
 0x416   : > { %2307 = vrcp.f32 %v1640_v29 }
 0x419   : > { %v1637_v34 = vpop.xlane.xlu1 %1636  ;;  %v1646_v16 = vpop.xlane.xlu0 %1645 }
 0x41a   : > { %2309 = vrcp.f32 %v1637_v34 }
 0x41d   : > { %v1643_v26 = vpop.xlane.xlu1 %1642 }
 0x420   : > { %v2308_v62 = vpop.eup %2307 }
 0x421   : > { %v1652_v58 = vpop.xlane.xlu0 %1651  ;;  %v1649_v59 = vpop.xlane.xlu1 %1648  ;;  %v1668_v7 = vmul.f32 %v2308_v62, %v2292_v47 }
 0x422   : > { %2311 = vrcp.f32 %v1652_v58  ;;  %v2129_v58 = vld [vmem:[%s3009_s4 + $0x8] sm:$0xf] }
 0x423   : > { %2313 = vrcp.f32 %v1649_v59  ;;  %v2130_v59 = vld [vmem:[%s3009_s4 + $0xc] sm:$0xf] }
 0x424   : > { %2315 = vrcp.f32 %v1646_v16  ;;  %v2310_v63 = vpop.eup %2309 }
 0x425   : > { %2317 = vrcp.f32 %v1643_v26  ;;  %v1658_v60 = vpop.xlane.xlu0 %1657  ;;  %v1655_v61 = vpop.xlane.xlu1 %1654  ;;  %v1667_v18 = vmul.f32 %v2310_v63, %v2296_v39  ;;  %v2128_v26 = vld [vmem:[%s3009_s4 + $0x4] sm:$0xf] }
 0x426   : > { %2319 = vrcp.f32 %v1658_v60 }
 0x427   : > { %2321 = vrcp.f32 %v1655_v61 }
 0x42c   : > { %v2312_v1 = vpop.eup %2311 }
 0x42d   : > { %v2314_v2 = vpop.eup %2313  ;;  %v1672_v3 = vmul.f32 %v2312_v1, %v2302_v46 }
 0x42e   : > { %v2316_v4 = vpop.eup %2315  ;;  %v1671_v5 = vmul.f32 %v2314_v2, %v2300_v42 }
 0x42f   : > { %v2318_v6 = vpop.eup %2317  ;;  %v1670_v11 = vmul.f32 %v2316_v4, %v2294_v36  ;;  %v1743_v14 = vcombine.low %v1668_v7, %v1672_v3  ;;  %v1744_v13 = vcombine.high %v1668_v7, %v1672_v3 }
 0x430   : > { %v2320_v8 = vpop.eup %2319  ;;  %v1669_v17 = vmul.f32 %v2318_v6, %v2298_v49  ;;  %v1676_v25 = vcombine.high %v1667_v18, %v1671_v5  ;;  %v1675_v44 = vcombine.low %v1667_v18, %v1671_v5 }
 0x431   : > { %v2322_v10 = vpop.eup %2321  ;;  %v1674_v12 = vmul.f32 %v2320_v8, %v2306_v57  ;;  %v1751_v22 = vrot.slane %v1743_v14, %v2641_v53  ;;  %v1758_v33 = vrot.slane %v1744_v13, %v2641_v53 }
 0x432   : > { %v1673_v30 = vmul.f32 %v2322_v10, %v2304_v56  ;;  %v1690_v9 = vrot.slane %v1676_v25, %v2641_v53  ;;  %v1683_v49 = vrot.slane %v1675_v44, %v2641_v53 }
 0x433   : > { %v1759_v27 = vcombine.low %v1670_v11, %v1674_v12  ;;  %v1760_v31 = vcombine.high %v1670_v11, %v1674_v12 }
 0x434   : > { %v1692_v32 = vcombine.high %v1669_v17, %v1673_v30  ;;  %v1691_v47 = vcombine.low %v1669_v17, %v1673_v30 }
 0x435   : > { %v1767_v24 = vrot.slane %v1759_v27, %v2641_v53  ;;  %v1774_v20 = vrot.slane %v1760_v31, %v2641_v53 }
 0x436   : > { %v1706_v15 = vrot.slane %v1692_v32, %v2641_v53  ;;  %v1699_v43 = vrot.slane %v1691_v47, %v2641_v53  ;;  %v2432_v32 = vmov 839922192   ;;  %v2324_v47 = vld [vmem:[%s2531_s17] sm:$0xff] }
 0x437   : > { %v1776_v21 = vcombine.high %v1751_v22, %v1767_v24  ;;  %v1791_v45 = vcombine.low %v1758_v33, %v1774_v20  ;;  %v1775_v48 = vcombine.low %v1751_v22, %v1767_v24  ;;  %v1792_v39 = vcombine.high %v1758_v33, %v1774_v20 }
 0x438   : > { %v1723_v35 = vcombine.low %v1690_v9, %v1706_v15  ;;  %v1724_v40 = vcombine.high %v1690_v9, %v1706_v15  ;;  %v1708_v42 = vcombine.high %v1683_v49, %v1699_v43  ;;  %v1707_v56 = vcombine.low %v1683_v49, %v1699_v43 }
 0x439   : > { %v1790_v38 = vrot.slane %v1776_v21, %v2659_v23  ;;  %v1799_v36 = vrot.slane %v1791_v45, %v2659_v23  ;;  %v1783_v51 = vrot.slane %v1775_v48, %v2659_v23  ;;  %v1806_v52 = vrot.slane %v1792_v39, %v2659_v23 }
 0x43a   : > { %v1731_v19 = vrot.slane %v1723_v35, %v2659_v23  ;;  %v1738_v50 = vrot.slane %v1724_v40, %v2659_v23  ;;  %v1722_v55 = vrot.slane %v1708_v42, %v2659_v23  ;;  %v1715_v41 = vrot.slane %v1707_v56, %v2659_v23 }
 0x43b   : > { %1844 = vrot.lane.b32.xlu1 %v1790_v38, %s2429_s16  ;;  %v1807_v46 = vcombine.high %v1783_v51, %v2421_v0  ;;  %v1808_v53 = vcombine.high %v1790_v38, %v2421_v0  ;;  %v1809_v28 = vcombine.high %v1799_v36, %v2421_v0  ;;  %v1810_v23 = vcombine.high %v1806_v52, %v2421_v0  ;;  %v2323_v38 = vld [vmem:[%s2536_s20] sm:$0xff] }
 0x43c   : > { %1824 = vrot.lane.b32.xlu0 %v1731_v19, %s2428_s15  ;;  %v1740_v57 = vcombine.high %v1722_v55, %v2421_v0  ;;  %v1741_v29 = vcombine.high %v1731_v19, %v2421_v0  ;;  %v1739_v34 = vcombine.high %v1715_v41, %v2421_v0  ;;  %v1742_v16 = vcombine.high %v1738_v50, %v2421_v0 }
 0x43d   : > { %v1918_v22 = vunpack.c.l.s4 %v2432_v32 }
 0x43f   : > { %1852 = vrot.lane.b32.xlu1 %v1799_v36, %s2428_s15  ;;  %v1919_v35 = vunpack.c.0.s8 %v1918_v22 }
 0x440   : > { %1832 = vrot.lane.b32.xlu0 %v1738_v50, %s2426_s13 }
 0x441   : > { %v1922_v44 = vsub.s32 %v1919_v35, %v2627_v37 }
 0x443   : > { %1860 = vrot.lane.b32.xlu1 %v1806_v52, %s2426_s13 }
 0x444   : > { %1840 = vrot.lane.b32.xlu0 %v1807_v46, %s2427_s14 }
 0x447   : > { %1816 = vrot.lane.b32.xlu1 %v1722_v55, %s2429_s16 }
 0x448   : > { %1900 = vperm.xlu0 %2267, %v1886_v54  }
 0x44b   : > { %1848 = vrot.lane.b32.xlu1 %v1808_v53, %s2425_s12 }
 0x44c   : > { %1820 = vrot.lane.b32.xlu0 %v1740_v57, %s2425_s12  ;;  %s2433_s12 = smov [#allocation2]  }
 0x44f   : > { %1856 = vrot.lane.b32.xlu1 %v1809_v28, %s2423_s10 }
 0x450   : > { %1828 = vrot.lane.b32.xlu0 %v1741_v29, %s2423_s10 }
 0x453   : > { %1812 = vrot.lane.b32.xlu1 %v1739_v34, %s2427_s14  ;;  %s2141_s14 = sshll.u32 %s2491_s25, 7 }
 0x454   : > { %1836 = vrot.lane.b32.xlu0 %v1742_v16, %s2424_s11  ;;  %s2933_s26 = scalar_lea.hbm %s3010_s5, %s2141_s14  ;;  %s2940_s29 = scalar_lea.hbm %s3011_s6, %s2141_s14 }
 0x457   : > { %1864 = vrot.lane.b32.xlu1 %v1810_v23, %s2424_s11  ;;  %s2923_s11 = sand.u32 1, %s2411_s22  }
 0x458   : > { %1915 = vperm.xlu0 %2267, %v2128_v26   ;;  %s2098_s13 = sshll.u32 %s2923_s11, 3  ;;  %s1958_s9 = scalar_lea.sflag [#allocation3], %s2923_s11 }
 0x459   : > { %s263_s20 = scalar_lea.vmem [#allocation2], %s2098_s13  ;;  %s270_s17 = scalar_lea.vmem [#allocation4], %s2098_s13 }
 0x45a   : > { %s1977_s15 = sshll.u32 %s263_s20, 4  ;;  %s1991_s16 = sshll.u32 %s270_s17, 4  ;;  %s2935_s15 = int_to_ptr.vmem [resolvable:$true] %s1977_s15  ;;  %s2942_s16 = int_to_ptr.vmem [resolvable:$true] %s1991_s16 }
 0x45b   : > { %1930 = vperm.xlu1 %2288, %v2129_v58   ;;  %s2325_s10 = scalar_lea.vmem %s2935_s15, 128  ;;  %s2329_s13 = sshll.u32 %s2433_s12, 4  ;;  %s2330_s13 = int_to_ptr.vmem [resolvable:$false] %s2329_s13 }
 0x45c   : > { %p2326_p11 = scmp.ne.s32.totalorder %s2935_s15, %s2325_s10  ;;  %s2331_s18 = scalar_lea.vmem %s2330_s13, 256 }
 0x45d   : > { %p2332_p0 = scmp.lt.s32.totalorder %s2935_s15, %s2330_s13  ;;  %p2333_p1 = scmp.lt.s32.totalorder %s2331_s18, %s2325_s10 }
 0x45e   : > { %p2327_p12 = pnand %p2326_p11, %p2508_p5 }
 0x45f   : > { %1945 = vperm.xlu1 %2288, %v2130_v59   ;;  %p2334_p2 = por %p2333_p1, %p2332_p0 }
 0x460   : > { %p2328_p13 = pneg %p2327_p12 }
 0x462   : > { %p2335_p3 = pnand %p2334_p2, %p2328_p13 }
 0x4ad   : > { %v1845_v60 = vpop.permute.xlu1 %1844 }
 0x4ae   : > { %v1825_v63 = vpop.permute.xlu0 %1824 }
 0x4b1   : > { %v1853_v61 = vpop.permute.xlu1 %1852 }
 0x4b2   : > { %v1833_v2 = vpop.permute.xlu0 %1832 }
 0x4b5   : > { %v1861_v62 = vpop.permute.xlu1 %1860 }
 0x4b6   : > { %v1841_v4 = vpop.permute.xlu0 %1840 }
 0x4b7   : > { %v1879_v7 = vsel %vm853_vm2, %v1783_v51, %v1841_v4 }
 0x4b8   : > { %v1880_v18 = vsel %vm1238_vm3, %v1879_v7, %v1845_v60 }
 0x4b9   : > { %v1817_v1 = vpop.permute.xlu1 %1816 }
 0x4bd   : > { %v1849_v0 = vpop.permute.xlu1 %1848 }
 0x4be   : > { %v1881_v12 = vsel %vm1869_vm5, %v1880_v18, %v1849_v0 }
 0x4bf   : > { %v1882_v17 = vsel %vm1871_vm6, %v1881_v12, %v1853_v61 }
 0x4c1   : > { %v1857_v3 = vpop.permute.xlu1 %1856 }
 0x4c2   : > { %v1883_v27 = vsel %vm1873_vm7, %v1882_v17, %v1857_v3 }
 0x4c3   : > { %v1884_v24 = vsel %vm1875_vm8, %v1883_v27, %v1861_v62 }
 0x4c5   : > { %v1813_v5 = vpop.permute.xlu1 %1812 }
 0x4c6   : > { %v1867_v8 = vsel %vm853_vm2, %v1715_v41, %v1813_v5 }
 0x4c7   : > { %v1901_v6 = vpop.permute.xlu0 %1900  ;;  %v1868_v11 = vsel %vm1238_vm3, %v1867_v8, %v1817_v1 }
 0x4c9   : > { %v1865_v31 = vpop.permute.xlu1 %1864 }
 0x4ca   : > { %v1885_v15 = vsel %vm1877_vm9, %v1884_v24, %v1865_v31 }
 0x4cb   : > { %v1821_v10 = vpop.permute.xlu0 %1820 }
 0x4cc   : > { %v1870_v14 = vsel %vm1869_vm5, %v1868_v11, %v1821_v10 }
 0x4cd   : > { %v1872_v25 = vsel %vm1871_vm6, %v1870_v14, %v1825_v63 }
 0x4cf   : > { %v1829_v30 = vpop.permute.xlu0 %1828 }
 0x4d0   : > { %v1874_v13 = vsel %vm1873_vm7, %v1872_v25, %v1829_v30 }
 0x4d1   : > { %v1876_v9 = vsel %vm1875_vm8, %v1874_v13, %v1833_v2 }
 0x4d3   : > { %v1837_v20 = vpop.permute.xlu0 %1836 }
 0x4d4   : > { %v1878_v21 = vsel %vm1877_vm9, %v1876_v9, %v1837_v20 }
 0x4d5   : > { %v1895_v33 = vcombine.low %v1878_v21, %v1885_v15 }
 0x4d7   : > { %v1897_v45 = vmul.f32 %v2323_v38, %v1895_v33  ;;  %v1927_v19 = vmul.f32 %v2324_v47, %v1895_v33  ;;  %v1916_v49 = vpop.permute.xlu0 %1915 }
 0x4d8   : > { %v1923_v55 = vrot.slane %v1916_v49, %v1922_v44 }
 0x4d9   : > { %v1904_v40 = vcombine.high %v1897_v45, %v1897_v45  ;;  %v1934_v48 = vcombine.high %v1927_v19, %v1927_v19  ;;  %v1906_v39 = vmul.f32 %v1901_v6, %v1897_v45 }
 0x4da   : > { %v1931_v36 = vpop.permute.xlu1 %1930 }
 0x4db   : > { %v1907_v43 = vmul.f32 %v1904_v40, %v1901_v6  ;;  %v1936_v50 = vmul.f32 %v1931_v36, %v1927_v19  ;;  %v1937_v51 = vmul.f32 %v1934_v48, %v1931_v36 }
 0x4dd   : > { %v1910_v52 = vcombine.low %v1906_v39, %v1907_v43  ;;  %v1940_v42 = vcombine.low %v1936_v50, %v1937_v51 }
 0x4de   : > { %v1946_v46 = vpop.permute.xlu1 %1945 }
 0x4df   : > { %v1912_v54 = vadd.f32 %v2324_v47, %v1910_v52  ;;  %v1942_v53 = vadd.f32 %v2323_v38, %v1940_v42  ;;  %v1953_v56 = vrot.slane %v1946_v46, %v1922_v44 }
 0x4e1   : > { %v1925_v37 = vadd.f32 %v1923_v55, %v1912_v54  ;;  %v1955_v57 = vadd.f32 %v1953_v56, %v1942_v53 }
 0x4e3   : > { %1926 = vst [vmem:[%s263_s20] sm:$0xff] %v1925_v37  ;;  %1956 = vst [vmem:[%s270_s17] sm:$0xff] %v1955_v57 }
 0x4e4   : > { %2338 = shalt.err (!%p2335_p3)
}
 0x4e5   : > { %s2339_s14 = scalar_lea.hbm %s2933_s26, 128  ;;  %s2343_s19 = scalar_lea.hbm %s3010_s5, 256 }
 0x4e6   : > { %p2340_p4 = scmp.ne.s32.totalorder %s2933_s26, %s2339_s14  ;;  %p2344_p9 = scmp.lt.u32.totalorder %s2933_s26, %s3010_s5 }
 0x4e7   : > { %p2345_p10 = scmp.lt.u32.totalorder %s2343_s19, %s2339_s14  ;;  %p2347_p12 = scmp.lt.u32.totalorder %s2339_s14, %s2933_s26 }
 0x4e8   : > { %p2341_p7 = pnand %p2340_p4, %p2508_p5 }
 0x4e9   : > { %p2346_p11 = por %p2345_p10, %p2344_p9 }
 0x4ea   : > { %p2342_p8 = pneg %p2341_p7 }
 0x4eb   : > { %p2348_p13 = por %p2347_p12, %p2346_p11 }
 0x4ed   : > { %p2349_p0 = pnand %p2348_p13, %p2342_p8 }
 0x4ef   : > { %2352 = shalt.err (!%p2349_p0)
}
 0x4f0   : > { %2211 = dma.vmem_to_hbm [thread:$0]  (%p2508_p5), %s2935_s15, 128, %s2933_s26, %s1958_s9  }
 0x4f1   : > { %s1963_s10 = scalar_lea.sflag [#allocation5], %s2923_s11  ;;  %s2353_s12 = scalar_lea.vmem %s2942_s16, 128 }
 0x4f2   : > { %p2354_p1 = scmp.ne.s32.totalorder %s2942_s16, %s2353_s12  ;;  %s2434_s13 = smov [#allocation4]  }
 0x4f3   : > { %s2357_s18 = sshll.u32 %s2434_s13, 4  ;;  %s2358_s18 = int_to_ptr.vmem [resolvable:$false] %s2357_s18 }
 0x4f4   : > { %p2355_p2 = pnand %p2354_p1, %p2508_p5  ;;  %s2359_s14 = scalar_lea.vmem %s2358_s18, 256 }
 0x4f5   : > { %p2360_p4 = scmp.lt.s32.totalorder %s2942_s16, %s2358_s18  ;;  %p2361_p7 = scmp.lt.s32.totalorder %s2359_s14, %s2353_s12 }
 0x4f6   : > { %p2356_p3 = pneg %p2355_p2 }
 0x4f7   : > { %p2362_p8 = por %p2361_p7, %p2360_p4 }
 0x4f9   : > { %p2363_p9 = pnand %p2362_p8, %p2356_p3 }
 0x4fb   : > { %2366 = shalt.err (!%p2363_p9)
}
 0x4fc   : > { %s2367_s11 = scalar_lea.hbm %s2940_s29, 128  ;;  %s2371_s9 = scalar_lea.hbm %s3011_s6, 256 }
 0x4fd   : > { %p2368_p10 = scmp.ne.s32.totalorder %s2940_s29, %s2367_s11  ;;  %p2372_p13 = scmp.lt.u32.totalorder %s2940_s29, %s3011_s6 }
 0x4fe   : > { %p2373_p0 = scmp.lt.u32.totalorder %s2371_s9, %s2367_s11  ;;  %p2375_p2 = scmp.lt.u32.totalorder %s2367_s11, %s2940_s29 }
 0x4ff   : > { %p2369_p11 = pnand %p2368_p10, %p2508_p5 }
 0x500   : > { %p2374_p1 = por %p2373_p0, %p2372_p13 }
 0x501   : > { %p2370_p12 = pneg %p2369_p11 }
 0x502   : > { %p2376_p3 = por %p2375_p2, %p2374_p1 }
 0x504   : > { %p2377_p4 = pnand %p2376_p3, %p2370_p12 }
 0x506   : > { %2380 = shalt.err (!%p2377_p4)
}
 0x507   : > { %2212 = dma.vmem_to_hbm [thread:$0]  (%p2508_p5), %s2942_s16, 128, %s2940_s29, %s1963_s10  }
 0x508 PF: > { %p2222_p7 = scmp.ge.s32.totalorder %s2419_s24, 2  ;;  %s2003_s19 = sand.u32 1, %s2407_s21  }
 0x509   : > { %s2004_s25 = scalar_lea.sflag [#allocation3], %s2003_s19 }
 0x50a   : > { %p2216_p8 = pnand %p2222_p7, %p2512_p6 }
 0x50c   : > { %2398 = dma.done.wait (!%p2216_p8), %s2004_s25, 128  }
 0x50d   : > { %2400 = vsyncadd (!%p2216_p8), %s2004_s25, 4294967168  ;;  %s2013_s28 = scalar_lea.sflag [#allocation5], %s2003_s19 }
 0x50e   : > { %2402 = dma.done.wait (!%p2216_p8), %s2013_s28, 128  }
 0x50f   : > { %2404 = vsyncadd (!%p2216_p8), %s2013_s28, 4294967168  ;;  %p20_p5 = scmp.ge.s32.totalorder %s2495_s27, 4   ;;  %s3016_s21 = smov %s2411_s22 }
 0x510   : > { %s3017_s22 = smov %s2415_s23  ;;  %s3018_s23 = smov %s2506_s30 }
 0x511   : > { %s3019_s24 = smov %s2495_s27  ;;  %22 = sbr.rel (!%p20_p5) target bundleno = 5 (0x5), region = 100 }
 0x518   :  { %2018 = vsyncpa [#allocation3], 1 }
 0x519   :  { %2020 = vsyncpa [#allocation3 + $0x1], 1 }
 0x51a   :  { %2021 = vsyncpa [#allocation5], 1 }
 0x51b   :  { %2023 = vsyncpa [#allocation5 + $0x1], 1 }

</bundles_post_ra>
